<compile_context>
chip_gen: v7x
topology: tpu7x:2x2x1
jax: 0.10.0
libtpu: 0.0.40
codegen_flags: <defaults>
</compile_context>

<pallas_src>
import jax
import jax.numpy as jnp
from jax.experimental import pallas as pl
from jax.experimental.pallas import tpu as pltpu


def _round_up(v, m):
    return ((v + m - 1) // m) * m


def gru_kernel(x_ref, h_ref, wr_x_ref, wr_h_ref, br_ref,
               w_rh_ref, w_x_ref, bw_ref, out_ref):
    x = x_ref[...]                                   # (TM, Ip) compute dtype
    h = h_ref[...]                                   # (TM, Hp) compute dtype

    # rt = sigmoid(x @ Wr_x + h @ Wr_h + br)  -- f32 accumulation/activation.
    rt = jax.nn.sigmoid(
        jnp.dot(x, wr_x_ref[...], preferred_element_type=jnp.float32)
        + jnp.dot(h, wr_h_ref[...], preferred_element_type=jnp.float32)
        + br_ref[...])

    # ht = tanh((rt*h) @ W_rh + x @ W_x + bw)
    rh = (rt * h.astype(jnp.float32)).astype(w_rh_ref.dtype)
    w_pre = (jnp.dot(rh, w_rh_ref[...], preferred_element_type=jnp.float32)
             + jnp.dot(x, w_x_ref[...], preferred_element_type=jnp.float32)
             + bw_ref[...])
    out_ref[...] = jnp.tanh(w_pre).astype(out_ref.dtype)


def _choose_tm(m, block_rows, min_steps=4):
    """Largest 8-aligned row tile <= block_rows that still gives several
    grid steps (pipelining + 2-TC sharding on v7x)."""
    tm = min(block_rows, _round_up(m, 8))
    tm = max(8, (tm // 8) * 8)
    while tm > 8 and pl.cdiv(m, tm) < min_steps:
        tm = max(8, ((tm // 2) // 8) * 8)
    return tm


def gru_forward(x, h, params, *, block_rows=1024, compute_dtype=jnp.bfloat16):
    """x: (B, T, I), h: (B, T, H) -> (out, hidden), each (B, T, H).

    Output dtype is `compute_dtype` (bf16 by default to halve HBM store
    traffic; pass jnp.float32 for an exact-f32 path)."""
    B, T, I = x.shape
    H = h.shape[-1]
    M = B * T

    # Wz / bz are parameters of the module but never influence its outputs
    # (dead zt branch in the source forward) -- intentionally not used.
    (wr, br, _wz, _bz, w, bw) = params

    # ---- lane padding (multiples of 128) + dtype prep -------------------
    Ip, Hp = _round_up(I, 128), _round_up(H, 128)

    # Wr acts on cat([x, h]): rows [0, I) -> x, rows [I, I+H) -> h.
    wr_x = jnp.zeros((Ip, Hp), compute_dtype).at[:I, :H].set(
        wr[:I].astype(compute_dtype))
    wr_h = jnp.zeros((Hp, Hp), compute_dtype).at[:H, :H].set(
        wr[I:].astype(compute_dtype))
    # W acts on cat([rt*h, x]): rows [0, H) -> rt*h, rows [H, H+I) -> x.
    w_rh = jnp.zeros((Hp, Hp), compute_dtype).at[:H, :H].set(
        w[:H].astype(compute_dtype))
    w_x = jnp.zeros((Ip, Hp), compute_dtype).at[:I, :H].set(
        w[H:].astype(compute_dtype))
    # Biases stay f32 (tiny; added to the f32 accumulators).
    br_p = jnp.zeros((1, Hp), jnp.float32).at[:, :H].set(
        br.reshape(1, H).astype(jnp.float32))
    bw_p = jnp.zeros((1, Hp), jnp.float32).at[:, :H].set(
        bw.reshape(1, H).astype(jnp.float32))

    # ---- row tiling ------------------------------------------------------
    TM = _choose_tm(M, block_rows)
    Mp = _round_up(M, TM)                  # full last tile for the pipeliner
    grid = (Mp // TM,)

    # Activations: pad rows/lanes (no-op at aligned production shapes) + cast.
    x2 = jnp.zeros((Mp, Ip), compute_dtype).at[:M, :I].set(
        x.reshape(M, I).astype(compute_dtype))
    h2 = jnp.zeros((Mp, Hp), compute_dtype).at[:M, :H].set(
        h.reshape(M, H).astype(compute_dtype))

    # ---- VMEM budget (weights counted double-buffered; v7x-safe 64MiB cap) -
    esz = jnp.dtype(compute_dtype).itemsize
    act_bytes = 2 * TM * (Ip + Hp) * esz              # x/h tiles, 2 buffers
    out_bytes = 2 * TM * Hp * esz                     # out tile, 2 buffers
    wt_bytes = 2 * (2 * Ip * Hp + 2 * Hp * Hp) * esz  # weights, counted 2x
    b_bytes = 2 * 2 * Hp * 4                          # biases, counted 2x
    vmem_bytes = int(1.3 * (act_bytes + out_bytes + wt_bytes + b_bytes)) + (2 << 20)
    vmem_bytes = min(max(vmem_bytes, 16 << 20), 64 << 20)

    resident = lambda shape: pl.BlockSpec(shape, lambda i: (0, 0))

    out = pl.pallas_call(
        gru_kernel,
        out_shape=jax.ShapeDtypeStruct((Mp, Hp), compute_dtype),
        grid_spec=pltpu.PrefetchScalarGridSpec(
            num_scalar_prefetch=0,
            grid=grid,
            in_specs=[
                pl.BlockSpec((TM, Ip), lambda i: (i, 0)),   # x  (row-tiled)
                pl.BlockSpec((TM, Hp), lambda i: (i, 0)),   # h  (row-tiled)
                resident((Ip, Hp)),                          # Wr_x
                resident((Hp, Hp)),                          # Wr_h
                resident((1, Hp)),                           # br
                resident((Hp, Hp)),                          # W_rh
                resident((Ip, Hp)),                          # W_x
                resident((1, Hp)),                           # bw
            ],
            out_specs=pl.BlockSpec((TM, Hp), lambda i: (i, 0)),
        ),
        compiler_params=pltpu.CompilerParams(
            dimension_semantics=("parallel",),
            vmem_limit_bytes=vmem_bytes,
        ),
    )(x2, h2, wr_x, wr_h, br_p, w_rh, w_x, bw_p)

    ht = out[:M, :H].reshape(B, T, H)
    return ht, ht


def init_params(key, input_size, hidden_size):
    """Deterministic init mirroring nn.Linear(I+H, H) (weights stored transposed)."""
    I, H = input_size, hidden_size
    full = I + H
    k = 1.0 / jnp.sqrt(jnp.float32(full))
    keys = jax.random.split(key, 6)
    wr = jax.random.uniform(keys[0], (full, H), jnp.float32, -k, k)
    br = jax.random.uniform(keys[1], (H,), jnp.float32, -k, k)
    wz = jax.random.uniform(keys[2], (full, H), jnp.float32, -k, k)   # dead in fwd
    bz = jax.random.uniform(keys[3], (H,), jnp.float32, -k, k)        # dead in fwd
    w = jax.random.uniform(keys[4], (full, H), jnp.float32, -k, k)
    bw = jax.random.uniform(keys[5], (H,), jnp.float32, -k, k)
    return (wr, br, wz, bz, w, bw)


def gru_reference(x, h, params):
    """Pure-JAX f32 reference mirroring the PyTorch module's forward outputs."""
    (wr, br, _wz, _bz, w, bw) = params
    xh = jnp.concatenate([x, h], axis=-1)
    rt = jax.nn.sigmoid(xh @ wr + br)
    # zt = sigmoid(xh @ wz + bz) is computed by the module but never used.
    rhx = jnp.concatenate([rt * h, x], axis=-1)
    ht = jnp.tanh(rhx @ w + bw)
    return ht, ht


if __name__ == "__main__":
    input_size = 16
    hidden_size = 32
    B, T = 2, 8

    key = jax.random.PRNGKey(0)
    kx, kh, kp = jax.random.split(key, 3)
    x = jax.random.normal(kx, (B, T, input_size), jnp.float32)
    h = jax.random.normal(kh, (B, T, hidden_size), jnp.float32)
    params = init_params(kp, input_size, hidden_size)

    out_ref, _ = gru_reference(x, h, params)

    # Default path: bf16 operands, f32 MXU accumulation (HBM-optimal).
    out_bf16, hidden_bf16 = gru_forward(x, h, params)
    jax.block_until_ready(out_bf16)
    jax.block_until_ready(hidden_bf16)
    assert out_bf16.shape == (B, T, hidden_size)
    assert jnp.allclose(out_bf16.astype(jnp.float32), out_ref, atol=5e-2, rtol=5e-2)

    # Exact f32 path: tight check against the pure-JAX reference.
    out_f32, _ = gru_forward(x, h, params, compute_dtype=jnp.float32)
    jax.block_until_ready(out_f32)
    assert jnp.allclose(out_f32, out_ref, atol=1e-5, rtol=1e-5)

    print("KERNEL_OK")
</pallas_src>

<mosaic_0001>
module attributes {stable_mosaic.version = 11 : i64} {
  func.func @gru_kernel(%arg0: i32, %arg1: memref<8x128xbf16, #tpu.memory_space<vmem>>, %arg2: memref<8x128xbf16, #tpu.memory_space<vmem>>, %arg3: memref<128x128xbf16, #tpu.memory_space<vmem>>, %arg4: memref<128x128xbf16, #tpu.memory_space<vmem>>, %arg5: memref<1x128xf32, #tpu.memory_space<vmem>>, %arg6: memref<128x128xbf16, #tpu.memory_space<vmem>>, %arg7: memref<128x128xbf16, #tpu.memory_space<vmem>>, %arg8: memref<1x128xf32, #tpu.memory_space<vmem>>, %arg9: memref<8x128xbf16, #tpu.memory_space<vmem>>) attributes {dimension_semantics = [#tpu.dimension_semantics<parallel>], iteration_bounds = array<i64: 2>, scalar_prefetch = 0 : i64, scratch_operands = 0 : i64, tpu.core_type = #tpu.core_type<tc>, window_params = [{transform_indices = @transform_0, window_bounds = array<i64: 8, 128>}, {transform_indices = @transform_1, window_bounds = array<i64: 8, 128>}, {pipeline_mode = #tpu.pipeline_mode<synchronous>, transform_indices = @transform_2, window_bounds = array<i64: 128, 128>}, {pipeline_mode = #tpu.pipeline_mode<synchronous>, transform_indices = @transform_3, window_bounds = array<i64: 128, 128>}, {pipeline_mode = #tpu.pipeline_mode<synchronous>, transform_indices = @transform_4, window_bounds = array<i64: 1, 128>}, {pipeline_mode = #tpu.pipeline_mode<synchronous>, transform_indices = @transform_5, window_bounds = array<i64: 128, 128>}, {pipeline_mode = #tpu.pipeline_mode<synchronous>, transform_indices = @transform_6, window_bounds = array<i64: 128, 128>}, {pipeline_mode = #tpu.pipeline_mode<synchronous>, transform_indices = @transform_7, window_bounds = array<i64: 1, 128>}, {transform_indices = @transform_8, window_bounds = array<i64: 8, 128>}]} {
    %c0 = arith.constant 0 : index
    %c0_0 = arith.constant 0 : index
    %0 = vector.load %arg1[%c0, %c0_0] : memref<8x128xbf16, #tpu.memory_space<vmem>>, vector<8x128xbf16>
    %c0_1 = arith.constant 0 : index
    %c0_2 = arith.constant 0 : index
    %1 = vector.load %arg2[%c0_1, %c0_2] : memref<8x128xbf16, #tpu.memory_space<vmem>>, vector<8x128xbf16>
    %c0_3 = arith.constant 0 : index
    %c0_4 = arith.constant 0 : index
    %2 = vector.load %arg3[%c0_3, %c0_4] : memref<128x128xbf16, #tpu.memory_space<vmem>>, vector<128x128xbf16>
    %cst = arith.constant dense<0.000000e+00> : vector<8x128xf32>
    %3 = tpu.matmul %0, %2, %cst {dimension_numbers = #tpu.dot_dimension_numbers<[1], [0], [0], [1], [0, 0, 1, 1], [], []>} : vector<8x128xbf16>, vector<128x128xbf16>, vector<8x128xf32> -> vector<8x128xf32>
    %c0_5 = arith.constant 0 : index
    %c0_6 = arith.constant 0 : index
    %4 = vector.load %arg4[%c0_5, %c0_6] : memref<128x128xbf16, #tpu.memory_space<vmem>>, vector<128x128xbf16>
    %cst_7 = arith.constant dense<0.000000e+00> : vector<8x128xf32>
    %5 = tpu.matmul %1, %4, %cst_7 {dimension_numbers = #tpu.dot_dimension_numbers<[1], [0], [0], [1], [0, 0, 1, 1], [], []>} : vector<8x128xbf16>, vector<128x128xbf16>, vector<8x128xf32> -> vector<8x128xf32>
    %6 = arith.addf %3, %5 : vector<8x128xf32>
    %c0_8 = arith.constant 0 : index
    %c0_9 = arith.constant 0 : index
    %7 = vector.load %arg5[%c0_8, %c0_9] : memref<1x128xf32, #tpu.memory_space<vmem>>, vector<1x128xf32>
    %8 = vector.broadcast %7 : vector<1x128xf32> to vector<8x128xf32>
    %9 = arith.addf %6, %8 : vector<8x128xf32>
    %10 = arith.negf %9 : vector<8x128xf32>
    %11 = math.exp %10 : vector<8x128xf32>
    %cst_10 = arith.constant 1.000000e+00 : f32
    %12 = vector.broadcast %cst_10 : f32 to vector<8x128xf32>
    %13 = arith.addf %12, %11 : vector<8x128xf32>
    %14 = arith.divf %12, %13 : vector<8x128xf32>
    %15 = arith.extf %1 : vector<8x128xbf16> to vector<8x128xf32>
    %16 = arith.mulf %14, %15 : vector<8x128xf32>
    %17 = arith.truncf %16 : vector<8x128xf32> to vector<8x128xbf16>
    %c0_11 = arith.constant 0 : index
    %c0_12 = arith.constant 0 : index
    %18 = vector.load %arg6[%c0_11, %c0_12] : memref<128x128xbf16, #tpu.memory_space<vmem>>, vector<128x128xbf16>
    %cst_13 = arith.constant dense<0.000000e+00> : vector<8x128xf32>
    %19 = tpu.matmul %17, %18, %cst_13 {dimension_numbers = #tpu.dot_dimension_numbers<[1], [0], [0], [1], [0, 0, 1, 1], [], []>} : vector<8x128xbf16>, vector<128x128xbf16>, vector<8x128xf32> -> vector<8x128xf32>
    %c0_14 = arith.constant 0 : index
    %c0_15 = arith.constant 0 : index
    %20 = vector.load %arg7[%c0_14, %c0_15] : memref<128x128xbf16, #tpu.memory_space<vmem>>, vector<128x128xbf16>
    %cst_16 = arith.constant dense<0.000000e+00> : vector<8x128xf32>
    %21 = tpu.matmul %0, %20, %cst_16 {dimension_numbers = #tpu.dot_dimension_numbers<[1], [0], [0], [1], [0, 0, 1, 1], [], []>} : vector<8x128xbf16>, vector<128x128xbf16>, vector<8x128xf32> -> vector<8x128xf32>
    %22 = arith.addf %19, %21 : vector<8x128xf32>
    %c0_17 = arith.constant 0 : index
    %c0_18 = arith.constant 0 : index
    %23 = vector.load %arg8[%c0_17, %c0_18] : memref<1x128xf32, #tpu.memory_space<vmem>>, vector<1x128xf32>
    %24 = vector.broadcast %23 : vector<1x128xf32> to vector<8x128xf32>
    %25 = arith.addf %22, %24 : vector<8x128xf32>
    %26 = math.tanh %25 : vector<8x128xf32>
    %27 = arith.truncf %26 : vector<8x128xf32> to vector<8x128xbf16>
    %c0_19 = arith.constant 0 : index
    %c0_20 = arith.constant 0 : index
    %28 = vector.load %arg9[%c0_19, %c0_20] : memref<8x128xbf16, #tpu.memory_space<vmem>>, vector<8x128xbf16>
    tpu.vector_store %arg9[%c0_19, %c0_20], %27 {strides = array<i32>} : memref<8x128xbf16, #tpu.memory_space<vmem>>, vector<8x128xbf16>,
    return
  }
  func.func @transform_0(%arg0: i32) -> (i32, i32) {
    %c0_i32 = arith.constant 0 : i32
    %c0_i32_0 = arith.constant 0 : i32
    return %arg0, %c0_i32 : i32, i32
  }
  func.func @transform_1(%arg0: i32) -> (i32, i32) {
    %c0_i32 = arith.constant 0 : i32
    %c0_i32_0 = arith.constant 0 : i32
    return %arg0, %c0_i32 : i32, i32
  }
  func.func @transform_2(%arg0: i32) -> (i32, i32) {
    %c0_i32 = arith.constant 0 : i32
    %c0_i32_0 = arith.constant 0 : i32
    %c0_i32_1 = arith.constant 0 : i32
    return %c0_i32, %c0_i32_0 : i32, i32
  }
  func.func @transform_3(%arg0: i32) -> (i32, i32) {
    %c0_i32 = arith.constant 0 : i32
    %c0_i32_0 = arith.constant 0 : i32
    %c0_i32_1 = arith.constant 0 : i32
    return %c0_i32, %c0_i32_0 : i32, i32
  }
  func.func @transform_4(%arg0: i32) -> (i32, i32) {
    %c0_i32 = arith.constant 0 : i32
    %c0_i32_0 = arith.constant 0 : i32
    %c0_i32_1 = arith.constant 0 : i32
    return %c0_i32, %c0_i32_0 : i32, i32
  }
  func.func @transform_5(%arg0: i32) -> (i32, i32) {
    %c0_i32 = arith.constant 0 : i32
    %c0_i32_0 = arith.constant 0 : i32
    %c0_i32_1 = arith.constant 0 : i32
    return %c0_i32, %c0_i32_0 : i32, i32
  }
  func.func @transform_6(%arg0: i32) -> (i32, i32) {
    %c0_i32 = arith.constant 0 : i32
    %c0_i32_0 = arith.constant 0 : i32
    %c0_i32_1 = arith.constant 0 : i32
    return %c0_i32, %c0_i32_0 : i32, i32
  }
  func.func @transform_7(%arg0: i32) -> (i32, i32) {
    %c0_i32 = arith.constant 0 : i32
    %c0_i32_0 = arith.constant 0 : i32
    %c0_i32_1 = arith.constant 0 : i32
    return %c0_i32, %c0_i32_0 : i32, i32
  }
  func.func @transform_8(%arg0: i32) -> (i32, i32) {
    %c0_i32 = arith.constant 0 : i32
    %c0_i32_0 = arith.constant 0 : i32
    return %arg0, %c0_i32 : i32, i32
  }
}

</mosaic_0001>

<bundles_post_ra>
// kernel: tpu_custom_call.1
= control target key start
LH: loop header
LB: loop body
LE: loop exit
PB: predicated region body
PF: predicated region fallthrough
CT: control target
= control target key end

     0   :  { %s2019_s0 = inlined_call_operand.hbm [shape: bf16[16,128], index: 0, kind: input, shape index: {}]   ;;  %s2020_s1 = inlined_call_operand.hbm [shape: bf16[16,128], index: 1, kind: input, shape index: {}]   ;;  %s2021_s2 = inlined_call_operand.hbm [shape: bf16[128,128], index: 2, kind: input, shape index: {}]   ;;  %s2022_s3 = inlined_call_operand.hbm [shape: bf16[128,128], index: 3, kind: input, shape index: {}]   ;;  %s2023_s4 = inlined_call_operand.vmem [shape: f32[1,128], index: 4, kind: input, shape index: {}]   ;;  %s2024_s5 = inlined_call_operand.hbm [shape: bf16[128,128], index: 5, kind: input, shape index: {}]   ;;  %s2025_s6 = inlined_call_operand.hbm [shape: bf16[128,128], index: 6, kind: input, shape index: {}]   ;;  %s2026_s7 = inlined_call_operand.vmem [shape: f32[1,128], index: 7, kind: input, shape index: {}]   ;;  %s2027_s8 = inlined_call_operand.hbm [shape: bf16[16,128], index: 8, kind: output, shape index: {}]  }
   0x1   :  { %2032 = sst [smem:[#allocation21_spill]] %s2021_s2 }
   0x2   :  { %2033 = sst [smem:[#allocation22_spill]] %s2022_s3 }
   0x3   :  { %2034 = sst [smem:[#allocation23_spill]] %s2024_s5 }
   0x4   :  { %2035 = sst [smem:[#allocation24_spill]] %s2025_s6 }
   0x5   :  { %13 = vsyncpa [#allocation3], 0 }
   0x6   :  { %15 = vsyncpa [#allocation3 + $0x1], 0 }
   0x7   :  { %16 = vsyncpa [#allocation6], 0 }
   0x8   :  { %18 = vsyncpa [#allocation6 + $0x1], 0 }
   0x9   :  { %19 = vsyncpa [#allocation9], 0 }
   0xa   :  { %20 = vsyncpa [#allocation12], 0 }
   0xb   :  { %21 = vsyncpa [#allocation4], 0 }
   0xc   :  { %23 = vsyncpa [#allocation4 + $0x1], 0  ;;  %s1628_s27 = smov 0   ;;  %s1630_s28 = smov 0  }
   0xd   :  { %s1632_s29 = smov 0   ;;  %s1634_s30 = smov 0  }
   0xe LB: > { %s1572_s9 = smov [#allocation7]   ;;  %s1649_s11 = sadd.s32 4294967295, %s1570_s30   ;;  %s1570_s30 = sphi %s1634_s30, %s2065_s30   ;;  %s1566_s29 = sphi %s1632_s29, %s2064_s29   ;;  %s1562_s28 = sphi %s1630_s28, %s2063_s28   ;;  %s1558_s27 = sphi %s1628_s27, %s2062_s27  }
   0xf   : > { %s250_s10 = sshll.u32 %s1572_s9, 4  ;;  %p1009_p0 = scmp.ge.s32.totalorder %s1570_s30, 1  ;;  %s1654_s10 = int_to_ptr.vmem [resolvable:$true] %s250_s10 }
  0x10   : > { %p2028_p1 = scmp.eq.s32.totalorder %s1649_s11, 0  ;;  %p238_p2 = scmp.lt.s32.totalorder %s1570_s30, 3 }
  0x11   : > { %s1573_s13 = smov [#allocation8]   ;;  %s1574_s16 = smov [#allocation10]  }
  0x12   : > { %p1656_p3 = pnand %p1009_p0, %p238_p2  ;;  %s263_s14 = sshll.u32 %s1573_s13, 4  ;;  %s1669_s14 = int_to_ptr.vmem [resolvable:$true] %s263_s14 }
  0x13   : > { %s279_s17 = sshll.u32 %s1574_s16, 4  ;;  %s2038_s2 = sld [smem:[#allocation21_spill]]  ;;  %s1671_s17 = int_to_ptr.vmem [resolvable:$true] %s279_s17 }
  0x14   : > { %s2036_s12 = scalar_select %p1656_p3, 1, 0 }
  0x15   : > { %p1204_p5 = pneg %p1656_p3 }
  0x17   : > { %p1665_p6 = pnand %p1204_p5, %p2028_p1 }
  0x19   : > { %s1316_s20 = scalar_lea.hbm %s2038_s2, 1024  ;;  %p1681_p8 = pneg %p1665_p6 }
  0x1a   : > { %p1317_p7 = scmp.ne.s32.totalorder %s2038_s2, %s1316_s20  ;;  %p1323_p11 = scmp.lt.u32.totalorder %s1316_s20, %s2038_s2 }
  0x1c   : > { %p1319_p9 = pnand %p1681_p8, %p1317_p7 }
  0x1e   : > { %p1320_p10 = pneg %p1319_p9 }
  0x20   : > { %p1325_p12 = pnand %p1323_p11, %p1320_p10 }
  0x22   : > { %1328 = shalt.err (!%p1325_p12)
}
  0x23   : > { %s1329_s26 = scalar_lea.vmem %s1654_s10, 1024  ;;  %p1337_p5 = scmp.lt.s32.totalorder %s1654_s10, %s1654_s10 }
  0x24   : > { %p1330_p13 = scmp.ne.s32.totalorder %s1654_s10, %s1329_s26  ;;  %p1338_p4 = scmp.lt.s32.totalorder %s1329_s26, %s1329_s26 }
  0x26   : > { %p1332_p0 = pnand %p1330_p13, %p1681_p8  ;;  %p1339_p7 = por %p1338_p4, %p1337_p5 }
  0x28   : > { %p1333_p2 = pneg %p1332_p0 }
  0x2a   : > { %p1340_p9 = pnand %p1339_p7, %p1333_p2 }
  0x2c   : > { %1343 = shalt.err (!%p1340_p9)
}
  0x2d   : > { %s1575_s9 = smov 64   ;;  %s1576_s13 = smov 4  }
  0x2e   : > { %1207 = dma.hbm_to_vmem [thread:$0]  (!%p1665_p6), %s2038_s2, 1024, %s1654_s10, [#allocation6], %s1575_s9, %s1575_s9, %s1576_s13  }
  0x2f   : > { %s2040_s3 = sld [smem:[#allocation22_spill]] }
  0x35   : > { %s1344_s21 = scalar_lea.hbm %s2040_s3, 1024 }
  0x36   : > { %p1345_p4 = scmp.ne.s32.totalorder %s2040_s3, %s1344_s21  ;;  %p1351_p12 = scmp.lt.u32.totalorder %s1344_s21, %s2040_s3 }
  0x38   : > { %p1347_p10 = pnand %p1345_p4, %p1681_p8 }
  0x3a   : > { %p1348_p11 = pneg %p1347_p10 }
  0x3c   : > { %p1353_p13 = pnand %p1351_p12, %p1348_p11 }
  0x3e   : > { %1356 = shalt.err (!%p1353_p13)
}
  0x3f   : > { %s1357_s10 = scalar_lea.vmem %s1669_s14, 1024  ;;  %p1365_p7 = scmp.lt.s32.totalorder %s1669_s14, %s1669_s14 }
  0x40   : > { %p1358_p0 = scmp.ne.s32.totalorder %s1669_s14, %s1357_s10  ;;  %p1366_p9 = scmp.lt.s32.totalorder %s1357_s10, %s1357_s10 }
  0x42   : > { %p1360_p2 = pnand %p1358_p0, %p1681_p8  ;;  %p1367_p4 = por %p1366_p9, %p1365_p7 }
  0x44   : > { %p1361_p5 = pneg %p1360_p2 }
  0x46   : > { %p1368_p10 = pnand %p1367_p4, %p1361_p5 }
  0x48   : > { %1371 = shalt.err (!%p1368_p10)
}
  0x49   : > { %1210 = dma.hbm_to_vmem [thread:$0]  (!%p1665_p6), %s2040_s3, 1024, %s1669_s14, [#allocation9], %s1575_s9, %s1575_s9, %s1576_s13  }
  0x4a   : > { %s2041_s5 = sld [smem:[#allocation23_spill]] }
  0x50   : > { %s1372_s21 = scalar_lea.hbm %s2041_s5, 1024 }
  0x51   : > { %p1373_p11 = scmp.ne.s32.totalorder %s2041_s5, %s1372_s21  ;;  %p1379_p0 = scmp.lt.u32.totalorder %s1372_s21, %s2041_s5 }
  0x53   : > { %p1375_p12 = pnand %p1373_p11, %p1681_p8 }
  0x55   : > { %p1376_p13 = pneg %p1375_p12 }
  0x57   : > { %p1381_p2 = pnand %p1379_p0, %p1376_p13 }
  0x59   : > { %1384 = shalt.err (!%p1381_p2)
}
  0x5a   : > { %s1385_s14 = scalar_lea.vmem %s1671_s17, 1024  ;;  %p1393_p4 = scmp.lt.s32.totalorder %s1671_s17, %s1671_s17 }
  0x5b   : > { %p1386_p5 = scmp.ne.s32.totalorder %s1671_s17, %s1385_s14  ;;  %p1394_p10 = scmp.lt.s32.totalorder %s1385_s14, %s1385_s14 }
  0x5d   : > { %p1388_p7 = pnand %p1386_p5, %p1681_p8  ;;  %p1395_p11 = por %p1394_p10, %p1393_p4 }
  0x5f   : > { %p1389_p9 = pneg %p1388_p7 }
  0x61   : > { %p1396_p12 = pnand %p1395_p11, %p1389_p9 }
  0x63   : > { %1399 = shalt.err (!%p1396_p12)
}
  0x64   : > { %1213 = dma.hbm_to_vmem [thread:$0]  (!%p1665_p6), %s2041_s5, 1024, %s1671_s17, [#allocation9], %s1575_s9, %s1575_s9, %s1576_s13  }
  0x65   : > { %s1577_s18 = smov [#allocation11]   ;;  %s2042_s6 = sld [smem:[#allocation24_spill]] }
  0x66   : > { %s292_s19 = sshll.u32 %s1577_s18, 4  ;;  %s293_s19 = int_to_ptr.vmem [resolvable:$true] %s292_s19 }
  0x6b   : > { %s1400_s22 = scalar_lea.hbm %s2042_s6, 1024 }
  0x6c   : > { %p1401_p13 = scmp.ne.s32.totalorder %s2042_s6, %s1400_s22  ;;  %p1407_p5 = scmp.lt.u32.totalorder %s1400_s22, %s2042_s6 }
  0x6e   : > { %p1403_p0 = pnand %p1401_p13, %p1681_p8 }
  0x70   : > { %p1404_p2 = pneg %p1403_p0 }
  0x72   : > { %p1409_p7 = pnand %p1407_p5, %p1404_p2 }
  0x74   : > { %1412 = shalt.err (!%p1409_p7)
}
  0x75   : > { %s1413_s17 = scalar_lea.vmem %s293_s19, 1024  ;;  %p1421_p11 = scmp.lt.s32.totalorder %s293_s19, %s293_s19 }
  0x76   : > { %p1414_p9 = scmp.ne.s32.totalorder %s293_s19, %s1413_s17  ;;  %p1422_p12 = scmp.lt.s32.totalorder %s1413_s17, %s1413_s17 }
  0x78   : > { %p1416_p4 = pnand %p1414_p9, %p1681_p8  ;;  %p1423_p1 = por %p1422_p12, %p1421_p11 }
  0x7a   : > { %p1417_p10 = pneg %p1416_p4 }
  0x7c   : > { %p1424_p3 = pnand %p1423_p1, %p1417_p10 }
  0x7e   : > { %1427 = shalt.err (!%p1424_p3)
}
  0x7f   : > { %1216 = dma.hbm_to_vmem [thread:$0]  (!%p1665_p6), %s2042_s6, 1024, %s293_s19, [#allocation12], %s1575_s9, %s1575_s9, %s1576_s13  }
  0x80   : > { %s1008_s15 = sadd.s32 4294967294, %s1570_s30   ;;  %s1780_s23 = sadd.s32 1, %s1570_s30  }
  0x81   : > { %s33_s18 = ssub.s32 %s1570_s30, %s1780_s23  ;;  %s36_s20 = sadd.s32 1, %s1566_s29 }
  0x82   : > { %p34_p1 = scmp.eq.s32.totalorder %s33_s18, 0  ;;  %p43_p3 = scmp.ne.s32.totalorder %s1566_s29, %s1562_s28 }
  0x83   : > { %p44_p8 = scmp.eq.s32.totalorder %s1570_s30, 0  ;;  %p49_p13 = scmp.ne.s32.totalorder %s1562_s28, %s1558_s27 }
  0x84   : > { %s1791_s21 = scalar_select %p34_p1, %s1566_s29, %s36_s20  }
  0x85   : > { %p1793_p0 = por %p44_p8, %p43_p3  ;;  %p2045_p2 = scmp.eq.s32.totalorder %s1649_s11, 0 }
  0x86   : > { %2043 = sst [smem:[#allocation20_spill]] %s1791_s21  ;;  %p225_p5 = scmp.eq.s32.totalorder %s1649_s11, 1 }
  0x87   : > { %p1799_p6 = por %p2045_p2, %p49_p13  ;;  %p231_p7 = scmp.eq.s32.totalorder %s1008_s15, 1 }
  0x88   : > { %p1232_p9 = scmp.lt.s32.totalorder %s1570_s30, 2  ;;  %s309_s13 = sand.u32 1, %s1566_s29  }
  0x89   : > { %s2046_s9 = scalar_select %p1799_p6, 1, 0 }
  0x8a   : > { %p1806_p4 = por %p225_p5, %p43_p3  ;;  %p1810_p10 = por %p231_p7, %p49_p13 }
  0x8b   : > { %s1814_s25 = sshll.u32 %s309_s13, 2  ;;  %s1016_s26 = sshll.u32 %s1570_s30, 6 }
  0x8c   : > { %s2047_s19 = scalar_select %p1806_p4, 1, 0 }
  0x8d   : > { %s2048_s24 = scalar_select %p1810_p10, 1, 0 }
  0x8e   : > { %s1820_s10 = scalar_lea.hbm %s2019_s0, %s1016_s26  ;;  %s313_s16 = scalar_lea.vmem [#allocation2], %s1814_s25 }
  0x8f   : > { %s320_s15 = sshll.u32 %s313_s16, 4  ;;  %p1827_p11 = pnand %p1232_p9, %p1793_p0  ;;  %s1823_s15 = int_to_ptr.vmem [resolvable:$true] %s320_s15 }
  0x90   : > { %s1834_s14 = scalar_lea.hbm %s2020_s1, %s1016_s26  ;;  %s327_s17 = sand.u32 1, %s1570_s30  }
  0x91   : > { %s310_s3 = scalar_lea.sflag [#allocation3], %s309_s13  ;;  %s1428_s5 = scalar_lea.hbm %s1820_s10, 64 }
  0x92   : > { %p1429_p12 = scmp.ne.s32.totalorder %s1820_s10, %s1428_s5  ;;  %p1430_p1 = pneg %p1827_p11 }
  0x93   : > { %s1433_s6 = scalar_lea.hbm %s2019_s0, 128  ;;  %p1434_p13 = scmp.lt.u32.totalorder %s1820_s10, %s2019_s0 }
  0x94   : > { %p1431_p3 = pnand %p1430_p1, %p1429_p12  ;;  %p1435_p0 = scmp.lt.u32.totalorder %s1433_s6, %s1428_s5 }
  0x95   : > { %p1437_p5 = scmp.lt.u32.totalorder %s1428_s5, %s1820_s10 }
  0x96   : > { %p1432_p8 = pneg %p1431_p3  ;;  %p1436_p2 = por %p1435_p0, %p1434_p13 }
  0x98   : > { %p1438_p7 = por %p1437_p5, %p1436_p2 }
  0x9a   : > { %p1439_p9 = pnand %p1438_p7, %p1432_p8 }
  0x9c   : > { %1442 = shalt.err (!%p1439_p9)
}
  0x9d   : > { %s1443_s13 = scalar_lea.vmem %s1823_s15, 64  ;;  %s1578_s26 = smov [#allocation2]  }
  0x9e   : > { %p1444_p12 = scmp.ne.s32.totalorder %s1823_s15, %s1443_s13  ;;  %s1448_s20 = sshll.u32 %s1578_s26, 4  ;;  %s1449_s20 = int_to_ptr.vmem [resolvable:$false] %s1448_s20 }
  0x9f   : > { %s1450_s21 = scalar_lea.vmem %s1449_s20, 128  ;;  %p1451_p4 = scmp.lt.s32.totalorder %s1823_s15, %s1449_s20 }
  0xa0   : > { %p1446_p3 = pnand %p1444_p12, %p1430_p1  ;;  %p1452_p13 = scmp.lt.s32.totalorder %s1450_s21, %s1443_s13 }
  0xa2   : > { %p1447_p10 = pneg %p1446_p3  ;;  %p1453_p0 = por %p1452_p13, %p1451_p4 }
  0xa4   : > { %p1454_p2 = pnand %p1453_p0, %p1447_p10 }
  0xa6   : > { %1457 = shalt.err (!%p1454_p2)
}
  0xa7   : > { %1220 = dma.hbm_to_vmem [thread:$0]  (!%p1827_p11), %s1820_s10, 64, %s1823_s15, %s310_s3  }
  0xa8   : > { %s331_s5 = scalar_lea.vmem [#allocation5], %s1814_s25  ;;  %s328_s22 = scalar_lea.sflag [#allocation6], %s327_s17 }
  0xa9   : > { %s338_s6 = sshll.u32 %s331_s5, 4  ;;  %s1458_s16 = scalar_lea.hbm %s1834_s14, 64  ;;  %s339_s6 = int_to_ptr.vmem [resolvable:$true] %s338_s6 }
  0xaa   : > { %p1459_p4 = scmp.ne.s32.totalorder %s1834_s14, %s1458_s16  ;;  %s1463_s26 = scalar_lea.hbm %s2020_s1, 128 }
  0xab   : > { %p1464_p5 = scmp.lt.u32.totalorder %s1834_s14, %s2020_s1  ;;  %p1465_p7 = scmp.lt.u32.totalorder %s1463_s26, %s1458_s16 }
  0xac   : > { %p1461_p10 = pnand %p1459_p4, %p1430_p1  ;;  %p1467_p12 = scmp.lt.u32.totalorder %s1458_s16, %s1834_s14 }
  0xad   : > { %p1466_p9 = por %p1465_p7, %p1464_p5 }
  0xae   : > { %p1462_p8 = pneg %p1461_p10 }
  0xaf   : > { %p1468_p3 = por %p1467_p12, %p1466_p9 }
  0xb1   : > { %p1469_p13 = pnand %p1468_p3, %p1462_p8 }
  0xb3   : > { %1472 = shalt.err (!%p1469_p13)
}
  0xb4   : > { %s1473_s3 = scalar_lea.vmem %s339_s6, 64  ;;  %s1579_s25 = smov [#allocation5]  }
  0xb5   : > { %p1474_p0 = scmp.ne.s32.totalorder %s339_s6, %s1473_s3  ;;  %s1478_s10 = sshll.u32 %s1579_s25, 4  ;;  %s1479_s10 = int_to_ptr.vmem [resolvable:$false] %s1478_s10 }
  0xb6   : > { %s1480_s15 = scalar_lea.vmem %s1479_s10, 128  ;;  %p1481_p10 = scmp.lt.s32.totalorder %s339_s6, %s1479_s10 }
  0xb7   : > { %p1476_p2 = pnand %p1474_p0, %p1430_p1  ;;  %p1482_p6 = scmp.lt.s32.totalorder %s1480_s15, %s1473_s3 }
  0xb9   : > { %p1477_p4 = pneg %p1476_p2  ;;  %p1483_p5 = por %p1482_p6, %p1481_p10 }
  0xbb   : > { %p1484_p7 = pnand %p1483_p5, %p1477_p4 }
  0xbd   : > { %1487 = shalt.err (!%p1484_p7)
}
  0xbe   : > { %1223 = dma.hbm_to_vmem [thread:$0]  (!%p1827_p11), %s1834_s14, 64, %s339_s6, %s328_s22  }
  0xbf   : > { %p2050_p8 = scmp.ne.s32.totalorder %s2036_s12, 0 }
  0xc0   : > { %s1887_s17 = sand.u32 (!%p2050_p8), 1, %s1562_s28   ;;  %p2051_p6 = scmp.ne.s32.totalorder (!%p2050_p8), %s2046_s9, 0 }
  0xc1   : > { %347 = sbr.rel (%p2050_p8) target bundleno = 737 (0x2e1), region = 52  ;;  %s1890_s5 = sshll.u32 (!%p2050_p8), %s1887_s17, 2 }
  0xc2   : > { %s350_s16 = scalar_lea.sflag (!%p2050_p8), [#allocation3], %s1887_s17  ;;  %s353_s2 = scalar_lea.vmem (!%p2050_p8), [#allocation2], %s1890_s5 }
  0xc8   : > { %1533 = dma.done.wait (%p2051_p6), %s350_s16, 64  }
  0xc9   : > { %1535 = vsyncadd (%p2051_p6), %s350_s16, 4294967232  ;;  %s358_s12 = sand.u32 1, %s1649_s11   ;;  %s362_s14 = scalar_lea.vmem [#allocation5], %s1890_s5 }
  0xca   : > { %s359_s18 = scalar_lea.sflag [#allocation6], %s358_s12 }
  0xcb   : > { %1537 = dma.done.wait (%p2051_p6), %s359_s18, 64  }
  0xcc   : > { %1539 = vsyncadd (%p2051_p6), %s359_s18, 4294967232  ;;  %p2052_p11 = scmp.eq.s32.totalorder %s1649_s11, 0 }
  0xce   : > { %1541 = dma.done.wait (%p2052_p11), [#allocation6], 1024   ;;  %p2053_p1 = pmov %p2052_p11 }
  0xd0   : > { %1543 = vsyncadd (%p2053_p1), [#allocation6], 4294966272  ;;  %p2054_p9 = pmov %p2053_p1 }
  0xd1   : > { %p2055_p12 = pmov %p2053_p1 }
  0xd2   : > { %1545 = dma.done.wait (%p2054_p9), [#allocation9], 2048  }
  0xd3   : > { %1547 = vsyncadd (%p2055_p12), [#allocation9], 4294965248  ;;  %p2056_p3 = pmov %p2053_p1 }
  0xd4   : > { %p2057_p13 = pmov %p2053_p1 }
  0xd5   : > { %1549 = dma.done.wait (%p2056_p3), [#allocation12], 1024  }
  0xd6   : > { %1551 = vsyncadd (%p2057_p13), [#allocation12], 4294966272  ;;  %v1580_v0 = vmov 0.0   ;;  %vm1581_vm0 = vmmov 0   ;;  %v1278_v1 = vld [vmem:[#allocation8] sm:$0xff]   ;;  %v1280_v3 = vld [vmem:[#allocation8 + $0x8] sm:$0xff]  }
  0xd7   : > { %1102 = vmatprep.subr.bf16.mxu0 %v1580_v0  ;;  %1122 = vmatprep.subr.bf16.mxu1 %v1580_v0  ;;  %v1279_v2 = vld [vmem:[#allocation7] sm:$0xff]   ;;  %v1281_v4 = vld [vmem:[#allocation7 + $0x8] sm:$0xff]   ;;  %v1282_v5 = vld [vmem:[#allocation8 + $0x10] sm:$0xff]   ;;  %s1063_s26 = sshll.u32 %s1649_s11, 6  ;;  %s415_s20 = scalar_lea.vmem [#allocation13], %s1890_s5 }
  0xd8   : > { %1118 = vmatprep.mubr.msk.bf16.mxu0 %vm1581_vm0, %v1580_v0  ;;  %1138 = vmatprep.mubr.msk.bf16.mxu1 %vm1581_vm0, %v1580_v0  ;;  %v1283_v6 = vld [vmem:[#allocation7 + $0x10] sm:$0xff]   ;;  %v1284_v7 = vld [vmem:[#allocation8 + $0x18] sm:$0xff]   ;;  %v1286_v9 = vld [vmem:[#allocation8 + $0x20] sm:$0xff]   ;;  %s877_s21 = sshll.u32 %s415_s20, 4  ;;  %s1975_s10 = scalar_lea.hbm %s2027_s8, %s1063_s26  ;;  %s1977_s21 = int_to_ptr.vmem [resolvable:$true] %s877_s21 }
  0xd9   : > { %1103 = vmatpush3.bf16.msra.mxu0 %v1278_v1  ;;  %1123 = vmatpush3.bf16.msra.mxu1 %v1279_v2  ;;  %v1285_v8 = vld [vmem:[#allocation7 + $0x18] sm:$0xff]   ;;  %v1287_v10 = vld [vmem:[#allocation7 + $0x20] sm:$0xff]   ;;  %v1288_v11 = vld [vmem:[#allocation8 + $0x28] sm:$0xff]   ;;  %s864_s15 = scalar_lea.sflag [#allocation4], %s1887_s17  ;;  %s1488_s16 = scalar_lea.vmem %s1977_s21, 64 }
  0xda   : > { %1104 = vmatprep.subr.bf16.mxu0 %v1580_v0  ;;  %1124 = vmatprep.subr.bf16.mxu1 %v1580_v0  ;;  %v1289_v12 = vld [vmem:[#allocation7 + $0x28] sm:$0xff]   ;;  %v1290_v13 = vld [vmem:[#allocation8 + $0x30] sm:$0xff]   ;;  %v1292_v15 = vld [vmem:[#allocation8 + $0x38] sm:$0xff]   ;;  %p1489_p0 = scmp.ne.s32.totalorder %s1977_s21, %s1488_s16  ;;  %p2058_p2 = scmp.ne.s32.totalorder %s2047_s19, 0 }
  0xdb   : > { %v1291_v14 = vld [vmem:[#allocation7 + $0x30] sm:$0xff]   ;;  %v1293_v16 = vld [vmem:[#allocation7 + $0x38] sm:$0xff]   ;;  %v1294_v19 = vld [vmem:[#allocation11] sm:$0xff]   ;;  %s1582_s11 = smov [#allocation13]  }
  0xdc   : > { %v1938_v17 = vld [vmem:[%s362_s14] sm:$0xf]  ;;  %v417_v18 = vld [vmem:[%s353_s2] sm:$0xf]  ;;  %v1295_v20 = vld [vmem:[#allocation10] sm:$0xff]   ;;  %p1490_p4 = pnand %p1489_p0, %p2058_p2  ;;  %s1492_s5 = sshll.u32 %s1582_s11, 4  ;;  %s1493_s5 = int_to_ptr.vmem [resolvable:$false] %s1492_s5 }
  0xdd   : > { %1105 = vmatpush3.bf16.msra.mxu0 %v1280_v3  ;;  %1125 = vmatpush3.bf16.msra.mxu1 %v1281_v4  ;;  %v1296_v21 = vld [vmem:[#allocation11 + $0x8] sm:$0xff]   ;;  %v1298_v23 = vld [vmem:[#allocation11 + $0x10] sm:$0xff]   ;;  %v1300_v25 = vld [vmem:[#allocation11 + $0x18] sm:$0xff]   ;;  %v641_v49 = vunpack.c.l.bf16 %v1938_v17  ;;  %s1494_s2 = scalar_lea.vmem %s1493_s5, 128  ;;  %p1495_p5 = scmp.lt.s32.totalorder %s1977_s21, %s1493_s5 }
  0xde   : > { %1106 = vmatprep.subr.bf16.mxu0 %v1580_v0  ;;  %1126 = vmatprep.subr.bf16.mxu1 %v1580_v0  ;;  %v1297_v22 = vld [vmem:[#allocation10 + $0x8] sm:$0xff]   ;;  %v1299_v24 = vld [vmem:[#allocation10 + $0x10] sm:$0xff]   ;;  %v1301_v26 = vld [vmem:[#allocation10 + $0x18] sm:$0xff]   ;;  %p1491_p10 = pneg %p1490_p4  ;;  %p1496_p7 = scmp.lt.s32.totalorder %s1494_s2, %s1488_s16 }
  0xdf   : > { %v1302_v27 = vld [vmem:[#allocation11 + $0x20] sm:$0xff]   ;;  %v1304_v29 = vld [vmem:[#allocation11 + $0x28] sm:$0xff]   ;;  %v1306_v31 = vld [vmem:[#allocation11 + $0x30] sm:$0xff]  }
  0xe0   : > { %v1303_v28 = vld [vmem:[#allocation10 + $0x20] sm:$0xff]   ;;  %v1305_v30 = vld [vmem:[#allocation10 + $0x28] sm:$0xff]   ;;  %v1307_v32 = vld [vmem:[#allocation10 + $0x30] sm:$0xff]   ;;  %p1497_p8 = por %p1496_p7, %p1495_p5 }
  0xe1   : > { %1107 = vmatpush3.bf16.msra.mxu0 %v1282_v5  ;;  %1127 = vmatpush3.bf16.msra.mxu1 %v1283_v6  ;;  %v1308_v33 = vld [vmem:[#allocation11 + $0x38] sm:$0xff]   ;;  %v1043_v37 = vld [vmem:[%s2023_s4] ss:$0 sm:$0xff] }
  0xe2   : > { %1108 = vmatprep.subr.bf16.mxu0 %v1580_v0  ;;  %1128 = vmatprep.subr.bf16.mxu1 %v1580_v0  ;;  %v1309_v34 = vld [vmem:[#allocation10 + $0x38] sm:$0xff]   ;;  %v1061_v58 = vld [vmem:[%s2026_s7] ss:$0 sm:$0xff]  ;;  %p1498_p6 = pnand %p1497_p8, %p1491_p10 }
  0xe5   : > { %1109 = vmatpush3.bf16.msra.mxu0 %v1284_v7  ;;  %1129 = vmatpush3.bf16.msra.mxu1 %v1285_v8 }
  0xe6   : > { %1110 = vmatprep.subr.bf16.mxu0 %v1580_v0  ;;  %1130 = vmatprep.subr.bf16.mxu1 %v1580_v0 }
  0xe9   : > { %1111 = vmatpush3.bf16.msra.mxu0 %v1286_v9  ;;  %1131 = vmatpush3.bf16.msra.mxu1 %v1287_v10 }
  0xea   : > { %1112 = vmatprep.subr.bf16.mxu0 %v1580_v0  ;;  %1132 = vmatprep.subr.bf16.mxu1 %v1580_v0 }
  0xed   : > { %1113 = vmatpush3.bf16.msra.mxu0 %v1288_v11  ;;  %1133 = vmatpush3.bf16.msra.mxu1 %v1289_v12 }
  0xee   : > { %1114 = vmatprep.subr.bf16.mxu0 %v1580_v0  ;;  %1134 = vmatprep.subr.bf16.mxu1 %v1580_v0 }
  0xf1   : > { %1115 = vmatpush3.bf16.msra.mxu0 %v1290_v13  ;;  %1135 = vmatpush3.bf16.msra.mxu1 %v1291_v14 }
  0xf2   : > { %1116 = vmatprep.subr.bf16.mxu0 %v1580_v0  ;;  %1136 = vmatprep.subr.bf16.mxu1 %v1580_v0 }
  0xf5   : > { %1117 = vmatpush3.bf16.msra.mxu0 %v1292_v15  ;;  %1137 = vmatpush3.bf16.msra.mxu1 %v1293_v16 }
  0xf6   : > { %1142 = vmatprep.subr.bf16.mxu0 %v1580_v0  ;;  %1162 = vmatprep.subr.bf16.mxu1 %v1580_v0 }
  0xf8   : > { %1119 = vmatmul.mubr.bf16.vlgmr.msra.gmra.mrb[0].mxu0 %v1938_v17  ;;  %1139 = vmatmul.mubr.bf16.vlgmr.msra.gmra.mrb[0].mxu1 %v417_v18 }
  0xf9   : > { %1158 = vmatprep.mubr.msk.bf16.mxu0 %vm1581_vm0, %v1580_v0  ;;  %1178 = vmatprep.mubr.msk.bf16.mxu1 %vm1581_vm0, %v1580_v0 }
  0xfa   : > { %1143 = vmatpush3.bf16.msra.mxu0 %v1294_v19  ;;  %1163 = vmatpush3.bf16.msra.mxu1 %v1295_v20 }
  0xfb   : > { %1144 = vmatprep.subr.bf16.mxu0 %v1580_v0  ;;  %1164 = vmatprep.subr.bf16.mxu1 %v1580_v0 }
  0xfe   : > { %1145 = vmatpush3.bf16.msra.mxu0 %v1296_v21  ;;  %1165 = vmatpush3.bf16.msra.mxu1 %v1297_v22 }
  0xff   : > { %1146 = vmatprep.subr.bf16.mxu0 %v1580_v0  ;;  %1166 = vmatprep.subr.bf16.mxu1 %v1580_v0 }
 0x102   : > { %1147 = vmatpush3.bf16.msra.mxu0 %v1298_v23  ;;  %1167 = vmatpush3.bf16.msra.mxu1 %v1299_v24 }
 0x103   : > { %1148 = vmatprep.subr.bf16.mxu0 %v1580_v0  ;;  %1168 = vmatprep.subr.bf16.mxu1 %v1580_v0 }
 0x106   : > { %1149 = vmatpush3.bf16.msra.mxu0 %v1300_v25  ;;  %1169 = vmatpush3.bf16.msra.mxu1 %v1301_v26 }
 0x107   : > { %1150 = vmatprep.subr.bf16.mxu0 %v1580_v0  ;;  %1170 = vmatprep.subr.bf16.mxu1 %v1580_v0 }
 0x10a   : > { %1151 = vmatpush3.bf16.msra.mxu0 %v1302_v27  ;;  %1171 = vmatpush3.bf16.msra.mxu1 %v1303_v28 }
 0x10b   : > { %1152 = vmatprep.subr.bf16.mxu0 %v1580_v0  ;;  %1172 = vmatprep.subr.bf16.mxu1 %v1580_v0 }
 0x10e   : > { %1153 = vmatpush3.bf16.msra.mxu0 %v1304_v29  ;;  %1173 = vmatpush3.bf16.msra.mxu1 %v1305_v30 }
 0x10f   : > { %1154 = vmatprep.subr.bf16.mxu0 %v1580_v0  ;;  %1174 = vmatprep.subr.bf16.mxu1 %v1580_v0 }
 0x112   : > { %1155 = vmatpush3.bf16.msra.mxu0 %v1306_v31  ;;  %1175 = vmatpush3.bf16.msra.mxu1 %v1307_v32 }
 0x113   : > { %1156 = vmatprep.subr.bf16.mxu0 %v1580_v0  ;;  %1176 = vmatprep.subr.bf16.mxu1 %v1580_v0 }
 0x116   : > { %1157 = vmatpush3.bf16.msra.mxu0 %v1308_v33  ;;  %1177 = vmatpush3.bf16.msra.mxu1 %v1309_v34 }
 0x119   : > { %1159 = vmatmul.mubr.bf16.vlgmr.msra.gmra.mrb[4].mxu0 %v417_v18 }
 0x1cb   : > { %v533_v35 = vpop.f32.mrb[0].mxu0  ;;  %v621_v36 = vpop.f32.mrb[0].mxu1 }
 0x1cc   : > { %v1120_v38 = vpop.f32.mrb[1].mxu0  ;;  %v622_v39 = vadd.f32 %v621_v36, %v533_v35  ;;  %v1140_v40 = vpop.f32.mrb[1].mxu1 }
 0x1cd   : > { %v536_v41 = vpop.f32.mrb[2].mxu0  ;;  %v624_v42 = vpop.f32.mrb[2].mxu1 }
 0x1ce   : > { %v1121_v43 = vpop.f32.mrb[3].mxu0  ;;  %v634_v44 = vadd.f32 %v1043_v37, %v622_v39  ;;  %v1141_v45 = vpop.f32.mrb[3].mxu1 }
 0x1d0   : > { %v1044_v46 = vmul.f32 -1.442695, %v634_v44 }
 0x1d2   : > { %1310 = vpow2.f32 %v1044_v46 }
 0x1dc   : > { %v1311_v47 = vpop.eup %1310 }
 0x1dd   : > { %v638_v48 = vadd.f32 1.0, %v1311_v47 }
 0x1df   : > { %1312 = vrcp.f32 %v638_v48 }
 0x1e9   : > { %v1313_v50 = vpop.eup %1312 }
 0x1ea   : > { %v642_v51 = vmul.f32 %v1313_v50, %v641_v49 }
 0x1ec   : > { %v643_v52 = vpack.c.bf16 %v642_v51, %v642_v51  ;;  %v758_v53 = vpop.f32.mrb[4].mxu0 }
 0x1ed   : > { %v1160_v54 = vpop.f32.mrb[5].mxu0 }
 0x1ee   : > { %1179 = vmatmul.mubr.bf16.vlgmr.msra.gmra.mrb[4].mxu1 %v643_v52  ;;  %v761_v55 = vpop.f32.mrb[6].mxu0 }
 0x1ef   : > { %v1161_v56 = vpop.f32.mrb[7].mxu0 }
 0x2c1   : > { %v846_v57 = vpop.f32.mrb[4].mxu1 }
 0x2c2   : > { %v847_v59 = vadd.f32 %v846_v57, %v758_v53  ;;  %v1180_v60 = vpop.f32.mrb[5].mxu1 }
 0x2c3   : > { %v849_v61 = vpop.f32.mrb[6].mxu1 }
 0x2c4   : > { %v859_v62 = vadd.f32 %v1061_v58, %v847_v59  ;;  %v1181_v63 = vpop.f32.mrb[7].mxu1 }
 0x2c6   : > { %1314 = vtanh.f32 %v859_v62 }
 0x2d0   : > { %v1315_v0 = vpop.eup %1314 }
 0x2d1   : > { %v861_v1 = vpack.c.bf16 %v1315_v0, %v1315_v0 }
 0x2d3   : > { %862 = vst [vmem:[%s415_s20] sm:$0xf] %v861_v1 }
 0x2d4   : > { %1501 = shalt.err (!%p1498_p6)
}
 0x2d5   : > { %s1502_s17 = scalar_lea.hbm %s1975_s10, 64  ;;  %s1506_s14 = scalar_lea.hbm %s2027_s8, 128 }
 0x2d6   : > { %p1503_p11 = scmp.ne.s32.totalorder %s1975_s10, %s1502_s17  ;;  %p1507_p12 = scmp.lt.u32.totalorder %s1975_s10, %s2027_s8 }
 0x2d7   : > { %p1508_p3 = scmp.lt.u32.totalorder %s1506_s14, %s1502_s17  ;;  %p1510_p0 = scmp.lt.u32.totalorder %s1502_s17, %s1975_s10 }
 0x2d8   : > { %p1504_p1 = pnand %p1503_p11, %p2058_p2 }
 0x2d9   : > { %p1509_p13 = por %p1508_p3, %p1507_p12 }
 0x2da   : > { %p1505_p9 = pneg %p1504_p1 }
 0x2db   : > { %p1511_p4 = por %p1510_p0, %p1509_p13 }
 0x2dd   : > { %p1512_p10 = pnand %p1511_p4, %p1505_p9 }
 0x2df   : > { %1515 = shalt.err (!%p1512_p10)
}
 0x2e0   : > { %1202 = dma.vmem_to_hbm [thread:$0]  (%p2058_p2), %s1977_s21, 64, %s1975_s10, %s864_s15  }
 0x2e1 PF: > { %s889_s22 = sand.u32 1, %s1558_s27   ;;  %p2059_p5 = scmp.ne.s32.totalorder %s2048_s24, 0 }
 0x2e2   : > { %p2060_p7 = scmp.ge.s32.totalorder %s1570_s30, 2  ;;  %s890_s13 = scalar_lea.sflag [#allocation4], %s889_s22 }
 0x2e4   : > { %p1225_p8 = pnand %p2060_p7, %p2059_p5 }
 0x2e6   : > { %1553 = dma.done.wait (!%p1225_p8), %s890_s13, 64  }
 0x2e7   : > { %1555 = vsyncadd (!%p1225_p8), %s890_s13, 4294967232  ;;  %s2061_s26 = sld [smem:[#allocation20_spill]]  ;;  %p26_p6 = scmp.ge.s32.totalorder %s1780_s23, 4  }
 0x2e8   : > { %s2062_s27 = smov %s1562_s28  ;;  %s2063_s28 = smov %s1566_s29 }
 0x2e9   : > { %s2065_s30 = smov %s1780_s23  ;;  %28 = sbr.rel (!%p26_p6) target bundleno = 14 (0xe), region = 126 }
 0x2ed   : > { %s2064_s29 = smov %s2061_s26 }
 0x2f0   :  { %895 = vsyncpa [#allocation3], 1 }
 0x2f1   :  { %897 = vsyncpa [#allocation3 + $0x1], 1 }
 0x2f2   :  { %898 = vsyncpa [#allocation6], 1 }
 0x2f3   :  { %900 = vsyncpa [#allocation6 + $0x1], 1 }
 0x2f4   :  { %901 = vsyncpa [#allocation9], 1 }
 0x2f5   :  { %902 = vsyncpa [#allocation12], 1 }
 0x2f6   :  { %903 = vsyncpa [#allocation4], 1 }
 0x2f7   :  { %905 = vsyncpa [#allocation4 + $0x1], 1 }

</bundles_post_ra>
